<compile_context>
chip_gen: v7x
topology: tpu7x:2x2x1
jax: 0.10.0
libtpu: 0.0.40
codegen_flags: <defaults>
</compile_context>

<pallas_src>
import jax
import jax.numpy as jnp
from jax.experimental import pallas as pl
from jax.experimental.pallas import tpu as pltpu


def gcn_kernel(adj_ref, dinv_src_ref, dinv_tgt_ref, x_ref, w_ref, b_ref, o_ref):
    """One tile of target nodes: normalize, aggregate (narrow dim first), transform, bias."""
    tj = o_ref.shape[0]
    j0 = pl.program_id(0) * tj                       # first target node of this tile

    adj_blk = adj_ref[...]                           # (N, TJ) bf16, exact 0/1 values
    n = adj_blk.shape[0]

    # A_hat block with remaining self loops fused in via a single select:
    #   a_hat[i, jj] = 1 if i == (j0 + jj) else adj[i, j0 + jj]
    row = jax.lax.broadcasted_iota(jnp.int32, (n, tj), 0)
    col = jax.lax.broadcasted_iota(jnp.int32, (n, tj), 1) + j0
    a_hat = jnp.where(row == col, jnp.asarray(1.0, adj_blk.dtype), adj_blk)  # bf16, exact

    # Scale sources, then aggregate over the narrow F_in first
    # (dominant cost ~ N*TJ*min(F_in, F_out)), contracting over adj's FIRST axis
    # so no transpose is ever materialized.  bf16 inputs, f32 accumulation.
    y = (dinv_src_ref[...] * x_ref[...]).astype(jnp.bfloat16)          # (N, F_in)
    agg = jax.lax.dot_general(a_hat, y, (((0,), (0,)), ((), ())),
                              preferred_element_type=jnp.float32)      # (TJ, F_in)
    agg = dinv_tgt_ref[...] * agg                                      # scale targets

    out = jnp.dot(agg, w_ref[...], preferred_element_type=jnp.float32) + b_ref[...]
    o_ref[...] = out.astype(o_ref.dtype)


def _choose_tile_rows(n):
    """Target-node tile size: full graph when small, else a 128-multiple sized so
    two double-buffered bf16 adjacency column-blocks stay well under v7x's 64 MiB."""
    if n <= 1024:
        return n                                      # full-dim blocks are always legal
    budget = 12 * 1024 * 1024                         # bytes per adj block (x2 buffers)
    tj = (budget // (2 * n)) // 128 * 128
    return max(128, min(1024, tj))


def global_layer(x, adj, weight, bias, *, tile_rows=None):
    """x: (N, F_in), adj: (N, N), weight: (F_in, F_out), bias: (F_out,)."""
    n, f_in = x.shape
    f_out = weight.shape[1]
    f_out_pad = pl.cdiv(f_out, 128) * 128             # lane-dense output stores

    # One cheap fused pass over adj (replaces the old full N^2 transpose):
    #   * binarize to bf16 (exact 0/1)  -> halves adjacency DMA + VMEM in the kernel
    #   * in-degree with remaining self loops -> dinv, precomputed so row tiles
    #     never need the whole adjacency resident.
    # (If the same adjacency is reused across layers, hoist these two out of the layer.)
    a_bin = adj != 0
    adj_b = a_bin.astype(jnp.bfloat16)
    deg = jnp.sum(a_bin, axis=0).astype(jnp.float32) \
        + jnp.where(jnp.diagonal(a_bin), 0.0, 1.0)    # deg >= 1 always
    dinv = jax.lax.rsqrt(deg).reshape(n, 1)

    # Zero-pad W / bias on the output-feature axis; zero columns are free multiplies.
    w_pad = jnp.zeros((f_in, f_out_pad), jnp.float32).at[:, :f_out].set(
        weight.astype(jnp.float32))
    b_pad = jnp.zeros((1, f_out_pad), jnp.float32).at[:, :f_out].set(
        bias.astype(jnp.float32).reshape(1, f_out))

    tj = tile_rows if tile_rows is not None else _choose_tile_rows(n)
    grid = (pl.cdiv(n, tj),)

    grid_spec = pl.GridSpec(
        grid=grid,
        in_specs=[
            pl.BlockSpec((n, tj), lambda j: (0, j)),          # adj column-block (bf16)
            pl.BlockSpec((n, 1), lambda j: (0, 0)),           # dinv for all sources
            pl.BlockSpec((tj, 1), lambda j: (j, 0)),          # dinv for this target tile
            pl.BlockSpec((n, f_in), lambda j: (0, 0)),        # x (untiled, fetched once)
            pl.BlockSpec((f_in, f_out_pad), lambda j: (0, 0)),
            pl.BlockSpec((1, f_out_pad), lambda j: (0, 0)),
        ],
        out_specs=pl.BlockSpec((tj, f_out_pad), lambda j: (j, 0)),
    )

    out_pad = pl.pallas_call(
        gcn_kernel,
        out_shape=jax.ShapeDtypeStruct((n, f_out_pad), jnp.float32),
        grid_spec=grid_spec,
        compiler_params=pltpu.CompilerParams(
            dimension_semantics=("parallel",),        # target tiles independent -> both v7x TCs
            vmem_limit_bytes=48 * 1024 * 1024),
    )(adj_b, dinv, dinv, x, w_pad, b_pad)

    return out_pad[:, :f_out]


def global_layer_ref(x, adj, weight, bias):
    """Pure-JAX f32 reference matching PyG GCNConv semantics."""
    n = adj.shape[0]
    a = (adj != 0).astype(jnp.float32)
    a_hat = jnp.maximum(a, jnp.eye(n, dtype=jnp.float32))
    deg = jnp.sum(a_hat, axis=0)                      # in-degree of target j
    dinv = 1.0 / jnp.sqrt(deg)
    xw = x @ weight
    norm_a = dinv[:, None] * a_hat * dinv[None, :]
    return norm_a.T @ xw + bias[None, :]


if __name__ == "__main__":
    N, F_IN, F_OUT = 64, 16, 32

    key = jax.random.PRNGKey(0)
    kx, ka, kw, kb = jax.random.split(key, 4)

    x = jax.random.normal(kx, (N, F_IN), dtype=jnp.float32)
    # Sparse-ish directed adjacency with zero diagonal (GCNConv adds self loops).
    adj_rand = jax.random.uniform(ka, (N, N))
    adj = (adj_rand > 0.85).astype(jnp.float32)
    adj = adj * (1.0 - jnp.eye(N, dtype=jnp.float32))

    # Deterministic parameter init (glorot-uniform-style weight, zero bias),
    # matching GCNConv(in_features, out_features) shapes.
    limit = (6.0 / (F_IN + F_OUT)) ** 0.5
    weight = jax.random.uniform(kw, (F_IN, F_OUT), minval=-limit, maxval=limit,
                                dtype=jnp.float32)
    bias = jnp.zeros((F_OUT,), dtype=jnp.float32)

    out = global_layer(x, adj, weight, bias)
    out = jax.block_until_ready(out)

    ref = global_layer_ref(x, adj, weight, bias)
    assert out.shape == (N, F_OUT)
    # bf16 feature inputs to the aggregation matmul (f32 accumulation) -> slightly
    # looser tolerance than a pure-f32 pipeline.
    assert jnp.allclose(out, ref, atol=2e-2, rtol=2e-2), "mismatch vs reference"

    print("KERNEL_OK")
</pallas_src>

<mosaic_0001>
module attributes {stable_mosaic.version = 11 : i64} {
  func.func @gcn_kernel(%arg0: i32, %arg1: memref<64x64xbf16, #tpu.memory_space<vmem>>, %arg2: memref<64x1xf32, #tpu.memory_space<vmem>>, %arg3: memref<64x1xf32, #tpu.memory_space<vmem>>, %arg4: memref<64x16xf32, #tpu.memory_space<vmem>>, %arg5: memref<16x128xf32, #tpu.memory_space<vmem>>, %arg6: memref<1x128xf32, #tpu.memory_space<vmem>>, %arg7: memref<64x128xf32, #tpu.memory_space<vmem>>) attributes {dimension_semantics = [#tpu.dimension_semantics<parallel>], iteration_bounds = array<i64: 1>, scalar_prefetch = 0 : i64, scratch_operands = 0 : i64, tpu.core_type = #tpu.core_type<tc>, window_params = [{transform_indices = @transform_0, window_bounds = array<i64: 64, 64>}, {pipeline_mode = #tpu.pipeline_mode<synchronous>, transform_indices = @transform_1, window_bounds = array<i64: 64, 1>}, {transform_indices = @transform_2, window_bounds = array<i64: 64, 1>}, {pipeline_mode = #tpu.pipeline_mode<synchronous>, transform_indices = @transform_3, window_bounds = array<i64: 64, 16>}, {pipeline_mode = #tpu.pipeline_mode<synchronous>, transform_indices = @transform_4, window_bounds = array<i64: 16, 128>}, {pipeline_mode = #tpu.pipeline_mode<synchronous>, transform_indices = @transform_5, window_bounds = array<i64: 1, 128>}, {transform_indices = @transform_6, window_bounds = array<i64: 64, 128>}]} {
    %c64_i32 = arith.constant 64 : i32
    %0 = arith.muli %arg0, %c64_i32 : i32
    %c0 = arith.constant 0 : index
    %c0_0 = arith.constant 0 : index
    %1 = vector.load %arg1[%c0, %c0_0] : memref<64x64xbf16, #tpu.memory_space<vmem>>, vector<64x64xbf16>
    %2 = tpu.iota {dimensions = array<i32: 0>} : vector<64x64xi32>
    %3 = tpu.iota {dimensions = array<i32: 1>} : vector<64x64xi32>
    %4 = vector.broadcast %0 : i32 to vector<64x64xi32>
    %5 = arith.addi %3, %4 : vector<64x64xi32>
    %6 = arith.cmpi eq, %2, %5 : vector<64x64xi32>
    %cst = arith.constant 1.000000e+00 : bf16
    %7 = vector.broadcast %cst : bf16 to vector<64x64xbf16>
    %8 = arith.select %6, %7, %1 : vector<64x64xi1>, vector<64x64xbf16>
    %c0_1 = arith.constant 0 : index
    %c0_2 = arith.constant 0 : index
    %9 = vector.load %arg2[%c0_1, %c0_2] : memref<64x1xf32, #tpu.memory_space<vmem>>, vector<64x1xf32>
    %c0_3 = arith.constant 0 : index
    %c0_4 = arith.constant 0 : index
    %10 = vector.load %arg4[%c0_3, %c0_4] : memref<64x16xf32, #tpu.memory_space<vmem>>, vector<64x16xf32>
    %11 = vector.broadcast %9 : vector<64x1xf32> to vector<64x16xf32>
    %12 = arith.mulf %11, %10 : vector<64x16xf32>
    %13 = arith.truncf %12 : vector<64x16xf32> to vector<64x16xbf16>
    %cst_5 = arith.constant dense<0.000000e+00> : vector<64x16xf32>
    %14 = tpu.matmul %8, %13, %cst_5 {dimension_numbers = #tpu.dot_dimension_numbers<[0], [0], [1], [1], [0, 1, 1, 1], [], []>} : vector<64x64xbf16>, vector<64x16xbf16>, vector<64x16xf32> -> vector<64x16xf32>
    %c0_6 = arith.constant 0 : index
    %c0_7 = arith.constant 0 : index
    %15 = vector.load %arg3[%c0_6, %c0_7] : memref<64x1xf32, #tpu.memory_space<vmem>>, vector<64x1xf32>
    %16 = vector.broadcast %15 : vector<64x1xf32> to vector<64x16xf32>
    %17 = arith.mulf %16, %14 : vector<64x16xf32>
    %c0_8 = arith.constant 0 : index
    %c0_9 = arith.constant 0 : index
    %18 = vector.load %arg5[%c0_8, %c0_9] : memref<16x128xf32, #tpu.memory_space<vmem>>, vector<16x128xf32>
    %cst_10 = arith.constant dense<0.000000e+00> : vector<64x128xf32>
    %19 = tpu.matmul %17, %18, %cst_10 {dimension_numbers = #tpu.dot_dimension_numbers<[1], [0], [0], [1], [0, 0, 1, 1], [], []>} : vector<64x16xf32>, vector<16x128xf32>, vector<64x128xf32> -> vector<64x128xf32>
    %c0_11 = arith.constant 0 : index
    %c0_12 = arith.constant 0 : index
    %20 = vector.load %arg6[%c0_11, %c0_12] : memref<1x128xf32, #tpu.memory_space<vmem>>, vector<1x128xf32>
    %21 = vector.broadcast %20 : vector<1x128xf32> to vector<64x128xf32>
    %22 = arith.addf %19, %21 : vector<64x128xf32>
    %c0_13 = arith.constant 0 : index
    %c0_14 = arith.constant 0 : index
    %23 = vector.load %arg7[%c0_13, %c0_14] : memref<64x128xf32, #tpu.memory_space<vmem>>, vector<64x128xf32>
    tpu.vector_store %arg7[%c0_13, %c0_14], %22 {strides = array<i32>} : memref<64x128xf32, #tpu.memory_space<vmem>>, vector<64x128xf32>,
    return
  }
  func.func @transform_0(%arg0: i32) -> (i32, i32) {
    %c0_i32 = arith.constant 0 : i32
    %c0_i32_0 = arith.constant 0 : i32
    return %c0_i32, %arg0 : i32, i32
  }
  func.func @transform_1(%arg0: i32) -> (i32, i32) {
    %c0_i32 = arith.constant 0 : i32
    %c0_i32_0 = arith.constant 0 : i32
    %c0_i32_1 = arith.constant 0 : i32
    return %c0_i32, %c0_i32_0 : i32, i32
  }
  func.func @transform_2(%arg0: i32) -> (i32, i32) {
    %c0_i32 = arith.constant 0 : i32
    %c0_i32_0 = arith.constant 0 : i32
    return %arg0, %c0_i32 : i32, i32
  }
  func.func @transform_3(%arg0: i32) -> (i32, i32) {
    %c0_i32 = arith.constant 0 : i32
    %c0_i32_0 = arith.constant 0 : i32
    %c0_i32_1 = arith.constant 0 : i32
    return %c0_i32, %c0_i32_0 : i32, i32
  }
  func.func @transform_4(%arg0: i32) -> (i32, i32) {
    %c0_i32 = arith.constant 0 : i32
    %c0_i32_0 = arith.constant 0 : i32
    %c0_i32_1 = arith.constant 0 : i32
    return %c0_i32, %c0_i32_0 : i32, i32
  }
  func.func @transform_5(%arg0: i32) -> (i32, i32) {
    %c0_i32 = arith.constant 0 : i32
    %c0_i32_0 = arith.constant 0 : i32
    %c0_i32_1 = arith.constant 0 : i32
    return %c0_i32, %c0_i32_0 : i32, i32
  }
  func.func @transform_6(%arg0: i32) -> (i32, i32) {
    %c0_i32 = arith.constant 0 : i32
    %c0_i32_0 = arith.constant 0 : i32
    return %arg0, %c0_i32 : i32, i32
  }
}

</mosaic_0001>

<bundles_post_ra>
// kernel: tpu_custom_call.1
= control target key start
LH: loop header
LB: loop body
LE: loop exit
PB: predicated region body
PF: predicated region fallthrough
CT: control target
= control target key end

     0   :  { %v578_v2 = vmov 0   ;;  %s772_s0 = inlined_call_operand.vmem [shape: bf16[64,64], index: 0, kind: input, shape index: {}]   ;;  %s773_s1 = inlined_call_operand.vmem [shape: f32[64,1], index: 1, kind: input, shape index: {}]   ;;  %s774_s2 = inlined_call_operand.vmem [shape: f32[64,1], index: 2, kind: input, shape index: {}]   ;;  %s775_s3 = inlined_call_operand.vmem [shape: f32[64,16], index: 3, kind: input, shape index: {}]   ;;  %s776_s4 = inlined_call_operand.vmem [shape: f32[16,128], index: 4, kind: input, shape index: {}]   ;;  %s777_s5 = inlined_call_operand.vmem [shape: f32[1,128], index: 5, kind: input, shape index: {}]   ;;  %s778_s6 = inlined_call_operand.hbm [shape: f32[64,128], index: 6, kind: output, shape index: {}]  }
   0x1   :  { %v74_v0 = vld [vmem:[%s773_s1 + $0x10] sm:$0xff]  ;;  %v72_v1 = vld [vmem:[%s773_s1] sm:$0xff]  ;;  %553 = vset.pattern.permute.xlu1 %v578_v2  ;;  %552 = vset.pattern.permute.xlu0 %v578_v2  ;;  %v75_v3 = vld [vmem:[%s773_s1 + $0x18] sm:$0xff] }
   0x2   :  { %100 = vperm.xlu1 %553, %v74_v0   ;;  %90 = vperm.xlu0 %552, %v72_v1   ;;  %v73_v4 = vld [vmem:[%s773_s1 + $0x8] sm:$0xff]  ;;  %v76_v6 = vld [vmem:[%s773_s1 + $0x20] sm:$0xff]  ;;  %v79_v7 = vld [vmem:[%s773_s1 + $0x38] sm:$0xff] }
   0x3   :  { %v77_v5 = vld [vmem:[%s773_s1 + $0x28] sm:$0xff]  ;;  %v78_v8 = vld [vmem:[%s773_s1 + $0x30] sm:$0xff] }
   0x6   :  { %105 = vperm.xlu1 %553, %v75_v3   ;;  %95 = vperm.xlu0 %552, %v73_v4  }
   0xa   :  { %115 = vperm.xlu1 %553, %v77_v5   ;;  %110 = vperm.xlu0 %552, %v76_v6  }
   0xe   :  { %125 = vperm.xlu1 %553, %v79_v7   ;;  %120 = vperm.xlu0 %552, %v78_v8  }
   0xf   :  { %11 = vsyncpa [#allocation3], 0  ;;  %v258_v9 = vld [vmem:[%s774_s2] sm:$0xff]  ;;  %v259_v10 = vld [vmem:[%s774_s2 + $0x8] sm:$0xff]  ;;  %v35_v11 = vlaneseq  ;;  %s579_s13 = smov [#allocation2]  }
  0x10   :  { %v260_v12 = vld [vmem:[%s774_s2 + $0x10] sm:$0xff]  ;;  %v261_v15 = vld [vmem:[%s774_s2 + $0x18] sm:$0xff]  ;;  %v262_v18 = vld [vmem:[%s774_s2 + $0x20] sm:$0xff]  ;;  %s466_s14 = sshll.u32 %s579_s13, 4  ;;  %s467_s14 = int_to_ptr.vmem [resolvable:$true] %s466_s14 }
  0x11   :  { %v36_v13 = vshrl.u32 %v35_v11, 7  ;;  %v45_v14 = vand.u32 127, %v35_v11  ;;  %v27_v21 = vld [vmem:[%s772_s0] sm:$0xf]  ;;  %v28_v22 = vld [vmem:[%s772_s0 + $0x4] sm:$0xf]  ;;  %p559_p1 = scmp.lt.s32.totalorder %s467_s14, %s467_s14 }
  0x12   :  { %268 = vperm.xlu1 %553, %v258_v9   ;;  %v263_v25 = vld [vmem:[%s774_s2 + $0x28] sm:$0xff]  ;;  %v264_v34 = vld [vmem:[%s774_s2 + $0x30] sm:$0xff]  ;;  %v265_v42 = vld [vmem:[%s774_s2 + $0x38] sm:$0xff] }
  0x13   :  { %v37_v16 = vadd.s32 8, %v36_v13  ;;  %vm48_vm0 = vcmp.eq.s32.totalorder %v36_v13, %v45_v14  ;;  %v38_v17 = vadd.s32 16, %v36_v13  ;;  %v39_v19 = vadd.s32 24, %v36_v13  ;;  %v29_v30 = vld [vmem:[%s772_s0 + $0x8] sm:$0xf]  ;;  %v82_v54 = vld [vmem:[%s775_s3 + $0x10] sm:$0xff] }
  0x14   :  { %vm656_vm2 = vmpackc.low %vm48_vm0, %vm48_vm0  ;;  %v40_v24 = vadd.s32 32, %v36_v13  ;;  %v41_v26 = vadd.s32 40, %v36_v13  ;;  %v30_v31 = vld [vmem:[%s772_s0 + $0xc] sm:$0xf]  ;;  %v42_v33 = vadd.s32 48, %v36_v13  ;;  %v43_v35 = vadd.s32 56, %v36_v13 }
  0x15   :  { %vm49_vm1 = vcmp.eq.s32.totalorder %v37_v16, %v45_v14  ;;  %vm50_vm4 = vcmp.eq.s32.totalorder %v38_v17, %v45_v14  ;;  %vm51_vm5 = vcmp.eq.s32.totalorder %v39_v19, %v45_v14  ;;  %v64_v27 = vsel %vm656_vm2, 1065369472, %v27_v21  ;;  %v31_v40 = vld [vmem:[%s772_s0 + $0x10] sm:$0xf]  ;;  %v32_v41 = vld [vmem:[%s772_s0 + $0x14] sm:$0xf] }
  0x16   :  { %273 = vperm.xlu1 %553, %v259_v10   ;;  %vm666_vm3 = vmpackc.low %vm49_vm1, %vm49_vm1  ;;  %vm52_vm8 = vcmp.eq.s32.totalorder %v40_v24, %v45_v14  ;;  %vm53_vm9 = vcmp.eq.s32.totalorder %v41_v26, %v45_v14  ;;  %vm54_vm12 = vcmp.eq.s32.totalorder %v42_v33, %v45_v14  ;;  %vm55_vm13 = vcmp.eq.s32.totalorder %v43_v35, %v45_v14  ;;  %v33_v46 = vld [vmem:[%s772_s0 + $0x18] sm:$0xf]  ;;  %v34_v47 = vld [vmem:[%s772_s0 + $0x1c] sm:$0xf] }
  0x17   :  { %v65_v28 = vsel %vm666_vm3, 1065369472, %v28_v22  ;;  %vm677_vm6 = vmpackc.low %vm50_vm4, %vm50_vm4  ;;  %v80_v55 = vld [vmem:[%s775_s3] sm:$0xff]  ;;  %v83_v56 = vld [vmem:[%s775_s3 + $0x18] sm:$0xff]  ;;  %vm180_vm0 = vcmask 523264   ;;  %vm323_vm1 = vcmask 130048  }
  0x18   :  { %vm687_vm7 = vmpackc.low %vm51_vm5, %vm51_vm5  ;;  %v477_v36 = vcombine.low %v64_v27, %v65_v28  ;;  %v66_v37 = vsel %vm677_vm6, 1065369472, %v29_v30  ;;  %v81_v57 = vld [vmem:[%s775_s3 + $0x8] sm:$0xff]  ;;  %v84_v1 = vld [vmem:[%s775_s3 + $0x20] sm:$0xff] }
  0x19   :  { %v67_v38 = vsel %vm687_vm7, 1065369472, %v30_v31  ;;  %vm698_vm10 = vmpackc.low %vm52_vm8, %vm52_vm8  ;;  %v85_v0 = vld [vmem:[%s775_s3 + $0x28] sm:$0xff]  ;;  %v87_v8 = vld [vmem:[%s775_s3 + $0x38] sm:$0xff] }
  0x1a   :  { %278 = vperm.xlu1 %553, %v260_v12   ;;  %vm61_vm11 = vmpackc.low %vm53_vm9, %vm53_vm9  ;;  %v478_v43 = vcombine.low %v66_v37, %v67_v38  ;;  %v68_v44 = vsel %vm698_vm10, 1065369472, %v31_v40  ;;  %v86_v9 = vld [vmem:[%s775_s3 + $0x30] sm:$0xff]  ;;  %v314_v20 = vld [vmem:[%s776_s4] sm:$0xff] }
  0x1b   :  { %v69_v45 = vsel %vm61_vm11, 1065369472, %v32_v41  ;;  %vm62_vm14 = vmpackc.low %vm54_vm12, %vm54_vm12  ;;  %v315_v21 = vld [vmem:[%s776_s4 + $0x8] sm:$0xff] }
  0x1c   :  { %vm63_vm15 = vmpackc.low %vm55_vm13, %vm55_vm13  ;;  %v479_v48 = vcombine.low %v68_v44, %v69_v45  ;;  %v70_v49 = vsel %vm62_vm14, 1065369472, %v33_v46  ;;  %v544_v22 = vpack.c.bf16 %v315_v21, %v314_v20 }
  0x1d   :  { %v71_v50 = vsel %vm63_vm15, 1065369472, %v34_v47  ;;  %v485_v47 = vld [vmem:[%s777_s5] ss:$0 sm:$0xff]  ;;  %s554_s5 = scalar_lea.vmem %s467_s14, 1024 }
  0x1e   :  { %283 = vperm.xlu1 %553, %v261_v15   ;;  %v480_v51 = vcombine.low %v70_v49, %v71_v50  ;;  %545 = vmatprep.subr.bf16.mxu1 %v544_v22  ;;  %p555_p0 = scmp.ne.s32.totalorder %s467_s14, %s554_s5  ;;  %p560_p2 = scmp.lt.s32.totalorder %s554_s5, %s554_s5 }
  0x1f   :  { %547 = vmatpush3.bf16.msra.mxu1 %v544_v22 }
  0x20   :  { %p561_p3 = por %p560_p2, %p559_p1 }
  0x22   :  { %288 = vperm.xlu1 %553, %v262_v18   ;;  %p562_p4 = pnand %p561_p3, %p555_p0 }
  0x26   :  { %293 = vperm.xlu1 %553, %v263_v25  }
  0x2a   :  { %298 = vperm.xlu1 %553, %v264_v34  }
  0x2c   :  { %164 = vxpose.xlu0.c.b16.start [1/4] (short) (narrow) %v477_v36, 64 }
  0x2e   :  { %303 = vperm.xlu1 %553, %v265_v42  }
  0x30   :  { %165 = vxpose.xlu0.c.b16.cont [2/4] (short) (narrow) %v478_v43, 64 }
  0x34   :  { %166 = vxpose.xlu0.c.b16.cont [3/4] (short) (narrow) %v479_v48, 64 }
  0x38   :  { %167 = vxpose.xlu0.c.b16.end [4/4] (short) (narrow) %v480_v51, 64 }
  0x81   :  { %v101_v52 = vpop.permute.xlu1 %100  ;;  %v91_v53 = vpop.permute.xlu0 %90 }
  0x82   :  { %v130_v60 = vmul.f32 %v101_v52, %v82_v54  ;;  %v128_v61 = vmul.f32 %v91_v53, %v80_v55 }
  0x85   :  { %v106_v58 = vpop.permute.xlu1 %105  ;;  %v96_v59 = vpop.permute.xlu0 %95 }
  0x86   :  { %v131_v62 = vmul.f32 %v106_v58, %v83_v56  ;;  %v129_v63 = vmul.f32 %v96_v59, %v81_v57 }
  0x88   :  { %v136_v2 = vpack.c.bf16 %v129_v63, %v128_v61  ;;  %v137_v5 = vpack.c.bf16 %v131_v62, %v130_v60 }
  0x89   :  { %v116_v3 = vpop.permute.xlu1 %115  ;;  %v111_v4 = vpop.permute.xlu0 %110 }
  0x8a   :  { %v133_v6 = vmul.f32 %v116_v3, %v85_v0  ;;  %v132_v7 = vmul.f32 %v111_v4, %v84_v1  ;;  %512 = vmatprep.subr.bf16.mxu0 %v136_v2 }
  0x8b   :  { %513 = vmatpush3.bf16.msra.mxu0 %v136_v2 }
  0x8c   :  { %514 = vmatprep.subr.bf16.mxu0 %v137_v5  ;;  %v138_v12 = vpack.c.bf16 %v133_v6, %v132_v7 }
  0x8d   :  { %v126_v10 = vpop.permute.xlu1 %125  ;;  %v121_v11 = vpop.permute.xlu0 %120 }
  0x8e   :  { %v135_v13 = vmul.f32 %v126_v10, %v87_v8  ;;  %v134_v14 = vmul.f32 %v121_v11, %v86_v9 }
  0x8f   :  { %515 = vmatpush3.bf16.msra.mxu0 %v137_v5 }
  0x90   :  { %516 = vmatprep.subr.bf16.mxu0 %v138_v12  ;;  %v139_v15 = vpack.c.bf16 %v135_v13, %v134_v14 }
  0x91   :  { %v269_v23 = vpop.permute.xlu1 %268 }
  0x92   :  { %v172_v16 = vpop.trf.xlu0 }
  0x93   :  { %517 = vmatpush3.bf16.msra.mxu0 %v138_v12  ;;  %520 = vmatprep.mubr.msk.bf16.mxu0 %vm180_vm0, %v172_v16 }
  0x94   :  { %518 = vmatprep.subr.bf16.mxu0 %v139_v15 }
  0x95   :  { %v274_v24 = vpop.permute.xlu1 %273 }
  0x96   :  { %v173_v17 = vpop.trf.xlu0 }
  0x97   :  { %519 = vmatpush3.bf16.msra.mxu0 %v139_v15 }
  0x99   :  { %v279_v25 = vpop.permute.xlu1 %278 }
  0x9a   :  { %521 = vmatmul.mubr.msk.bf16.vlgmr.msra.gmra.mrb[0].mxu0 %vm180_vm0, %v173_v17  ;;  %v174_v18 = vpop.trf.xlu0 }
  0x9b   :  { %524 = vmatprep.mubr.msk.bf16.mxu0 %vm180_vm0, %v174_v18 }
  0x9d   :  { %v284_v26 = vpop.permute.xlu1 %283 }
  0x9e   :  { %v175_v19 = vpop.trf.xlu0 }
  0xa1   :  { %v289_v27 = vpop.permute.xlu1 %288 }
  0xa2   :  { %525 = vmatmul.mubr.msk.bf16.gmra.mrb[4].mxu0 %vm180_vm0, %v175_v19 }
  0xa5   :  { %v294_v32 = vpop.permute.xlu1 %293 }
  0xa9   :  { %v299_v38 = vpop.permute.xlu1 %298 }
  0xad   :  { %v304_v45 = vpop.permute.xlu1 %303 }
 0x16d   :  { %v522_v28 = vpop.f32.mrb[0].mxu0 }
 0x16e   :  { %v227_v29 = vpop.f32.mrb[1].mxu0  ;;  %v308_v35 = vmul.f32 %v522_v28, %v279_v25 }
 0x16f   :  { %v306_v30 = vmul.f32 %v269_v23, %v227_v29  ;;  %v523_v31 = vpop.f32.mrb[2].mxu0 }
 0x170   :  { %v230_v33 = vpop.f32.mrb[3].mxu0  ;;  %v309_v36 = vmul.f32 %v523_v31, %v284_v26 }
 0x171   :  { %v307_v34 = vmul.f32 %v274_v24, %v230_v33  ;;  %532 = vmatprep.mubr.msk.f32.mxu1 %vm323_vm1, %v306_v30 }
 0x173   :  { %533 = vmatmul.mubr.msk.f32.vlgmr.msra.gmra.mrb[0].mxu1 %vm323_vm1, %v307_v34 }
 0x174   :  { %535 = vmatprep.mubr.msk.f32.mxu1 %vm323_vm1, %v308_v35 }
 0x175   :  { %v526_v37 = vpop.f32.mrb[4].mxu0 }
 0x176   :  { %v243_v39 = vpop.f32.mrb[5].mxu0  ;;  %v312_v44 = vmul.f32 %v526_v37, %v299_v38 }
 0x177   :  { %v310_v40 = vmul.f32 %v289_v27, %v243_v39  ;;  %v527_v41 = vpop.f32.mrb[6].mxu0  ;;  %536 = vmatmul.mubr.msk.f32.gmra.mrb[2].mxu1 %vm323_vm1, %v309_v36 }
 0x178   :  { %v246_v42 = vpop.f32.mrb[7].mxu0  ;;  %v313_v46 = vmul.f32 %v527_v41, %v304_v45 }
 0x179   :  { %v311_v43 = vmul.f32 %v294_v32, %v246_v42  ;;  %538 = vmatprep.mubr.msk.f32.mxu1 %vm323_vm1, %v310_v40 }
 0x17b   :  { %539 = vmatmul.mubr.msk.f32.gmra.mrb[4].mxu1 %vm323_vm1, %v311_v43 }
 0x17c   :  { %541 = vmatprep.mubr.msk.f32.mxu1 %vm323_vm1, %v312_v44 }
 0x17f   :  { %542 = vmatmul.mubr.msk.f32.gmra.mrb[6].mxu1 %vm323_vm1, %v313_v46 }
 0x246   :  { %v534_v48 = vpop.f32.mrb[0].mxu1 }
 0x247   :  { %v420_v49 = vadd.f32 %v534_v48, %v485_v47  ;;  %v414_v50 = vpop.f32.mrb[1].mxu1 }
 0x248   :  { %v415_v51 = vadd.f32 %v485_v47, %v414_v50 }
 0x249   :  { %454 = vst [vmem:[#allocation2 + $0x8] sm:$0xff] %v420_v49 }
 0x24a   :  { %453 = vst [vmem:[#allocation2] sm:$0xff] %v415_v51  ;;  %v537_v52 = vpop.f32.mrb[2].mxu1 }
 0x24b   :  { %v430_v53 = vadd.f32 %v537_v52, %v485_v47  ;;  %v424_v54 = vpop.f32.mrb[3].mxu1 }
 0x24c   :  { %v425_v55 = vadd.f32 %v485_v47, %v424_v54 }
 0x24d   :  { %456 = vst [vmem:[#allocation2 + $0x18] sm:$0xff] %v430_v53 }
 0x24e   :  { %455 = vst [vmem:[#allocation2 + $0x10] sm:$0xff] %v425_v55  ;;  %v540_v56 = vpop.f32.mrb[4].mxu1 }
 0x24f   :  { %v440_v57 = vadd.f32 %v540_v56, %v485_v47  ;;  %v434_v58 = vpop.f32.mrb[5].mxu1 }
 0x250   :  { %v435_v59 = vadd.f32 %v485_v47, %v434_v58 }
 0x251   :  { %458 = vst [vmem:[#allocation2 + $0x28] sm:$0xff] %v440_v57 }
 0x252   :  { %457 = vst [vmem:[#allocation2 + $0x20] sm:$0xff] %v435_v59  ;;  %v543_v60 = vpop.f32.mrb[6].mxu1 }
 0x253   :  { %v450_v61 = vadd.f32 %v543_v60, %v485_v47  ;;  %v444_v62 = vpop.f32.mrb[7].mxu1 }
 0x254   :  { %v445_v63 = vadd.f32 %v485_v47, %v444_v62 }
 0x255   :  { %460 = vst [vmem:[#allocation2 + $0x38] sm:$0xff] %v450_v61 }
 0x256   :  { %459 = vst [vmem:[#allocation2 + $0x30] sm:$0xff] %v445_v63 }
 0x257   :  { %565 = shalt.err (!%p562_p4)
}
 0x258   :  { %s566_s17 = scalar_lea.hbm %s778_s6, 1024 }
 0x259   :  { %p567_p5 = scmp.ne.s32.totalorder %s778_s6, %s566_s17  ;;  %p570_p6 = scmp.lt.u32.totalorder %s566_s17, %s778_s6 }
 0x25b   :  { %p572_p7 = pnand %p570_p6, %p567_p5 }
 0x25d   :  { %575 = shalt.err (!%p572_p7)
}
 0x25e   :  { %s580_s20 = smov 128   ;;  %s581_s21 = smov 8  }
 0x25f   :  { %472 = dma.vmem_to_hbm [thread:$0]  %s467_s14, 1024, %s778_s6, [#allocation3], %s580_s20, %s580_s20, %s581_s21  }
 0x260   :  { %576 = dma.done.wait [#allocation3], 1024  }
 0x261   :  { %577 = vsyncadd [#allocation3], 4294966272 }
 0x262   :  { %476 = vsyncpa [#allocation3], 1 }

</bundles_post_ra>
